<compile_context>
chip_gen: v7x
topology: tpu7x:2x2x1
jax: 0.10.0
libtpu: 0.0.40
codegen_flags: <defaults>
</compile_context>

<pallas_src>
import functools

import numpy as np
import jax
import jax.numpy as jnp
from jax.experimental import pallas as pl
from jax.experimental.pallas import tpu as pltpu


# ----------------------------------------------------------------------------
# Deterministic Gabor filter bank (host-side, mirrors GFB.initialize()).
# ----------------------------------------------------------------------------
def gabor_kernel(frequency, sigma_x, sigma_y, theta, offset, ks):
    half = (ks - 1) / 2.0
    ys, xs = np.mgrid[:ks, :ks].astype(np.float64)
    ys -= half
    xs -= half
    rotx = xs * np.cos(theta) + ys * np.sin(theta)
    roty = -xs * np.sin(theta) + ys * np.cos(theta)
    g = np.exp(-0.5 * ((rotx / sigma_x) ** 2 + (roty / sigma_y) ** 2))
    g *= np.cos(2.0 * np.pi * frequency * rotx + offset)
    g /= 2.0 * np.pi * sigma_x * sigma_y
    return g.astype(np.float32)


def build_gfb_weight(out_channels, in_channels, ks):
    """GFB weight: one Gabor per output channel, placed in input channel
    color[i] = i % in_channels; every other input channel stays zero."""
    i = np.arange(out_channels)
    sf = 0.06 + 0.04 * (i % 4)
    theta = np.pi * (i % 8) / 8.0
    sigx = 2.0 + 0.3 * (i % 3)
    sigy = 2.5 + 0.3 * (i % 5)
    phase = (np.pi / 2.0) * (i % 2)
    color = i % in_channels
    w = np.zeros((out_channels, in_channels, ks, ks), np.float32)
    for o in range(out_channels):
        w[o, int(color[o])] = gabor_kernel(sf[o], sigx[o], sigy[o],
                                           theta[o], phase[o], ks)
    return w


# ----------------------------------------------------------------------------
# Pallas kernel: pure MXU matmul on pre-laid-out operands (no relayouts).
# ----------------------------------------------------------------------------
def _gfb_kernel(w_ref, x_ref, o_ref, *, nb):
    # w_ref: (Cout, J)        lane-dense fused Gabor weight matrix (bf16)
    # x_ref: (nb, J, HWb)     phase-split im2col patches, pixels on lanes (bf16)
    # o_ref: (nb, Cout, HWb)  f32 output block, pixels on lanes
    w = w_ref[...]                       # load once per grid step
    for b in range(nb):                  # static unroll; each dot: K-depth = J
        o_ref[b] = jnp.dot(w, x_ref[b], preferred_element_type=jnp.float32)


def gfb_forward(x_nchw, weight, stride, *, batch_block=8,
                compute_dtype=jnp.bfloat16):
    """x_nchw: (N,C,H,W); weight: (Cout,C,K,K); stride: int -> (N,Cout,Ho,Wo)."""
    N, C, H, W = x_nchw.shape
    Cout, Cin, K, K2 = weight.shape
    assert Cin == C and K == K2
    s = int(stride)
    p = K // 2
    Ho = (H + 2 * p - K) // s + 1
    Wo = (W + 2 * p - K) // s + 1
    gh = (K - 1) // s + 1                 # spatial-shift groups (vertical)
    gw = (K - 1) // s + 1                 # spatial-shift groups (horizontal)
    Hq, Wq = Ho + gh - 1, Wo + gw - 1     # phase-split spatial extents
    Hp, Wp = Hq * s, Wq * s               # padded extents covering all reads
    HW = Ho * Wo
    J = gh * gw * s * s * C               # fused contraction length (192 here)

    # ---- wrapper-side layout prep (pure data movement, done in bf16) -------
    # TODO(synk): for bandwidth-critical v5e deployments this pad/transpose is
    # an extra HBM pass; it could be folded into an extra grid axis instead.
    x = x_nchw.astype(compute_dtype)
    pad_b, pad_r = Hp - H - p, Wp - W - p
    xe = jnp.pad(x, ((0, 0), (0, 0), (p, max(pad_b, 0)), (p, max(pad_r, 0))))
    xe = xe[:, :, :Hp, :Wp]
    # Phase split: xt[n, rh, rw, c, q1, q2] == x_pad[n, c, q1*s+rh, q2*s+rw]
    xt = xe.reshape(N, C, Hq, s, Wq, s).transpose(0, 3, 5, 1, 2, 4)
    # Shifted views -> phase-split im2col  P[n, (ih,iw,rh,rw,c), oh*Wo+ow]
    views = [xt[:, :, :, :, ih:ih + Ho, iw:iw + Wo]
             for ih in range(gh) for iw in range(gw)]
    patches = jnp.stack(views, axis=1).reshape(N, J, HW)

    # ---- lane-dense fused weight: Wm[o, (ih,iw,rh,rw,c)] --------------------
    # Out-of-window taps (ih*s+rh >= K or iw*s+rw >= K) are zero rows.
    w32 = jnp.asarray(weight, jnp.float32)
    w_pad = jnp.pad(w32, ((0, 0), (0, 0), (0, gh * s - K), (0, gw * s - K)))
    w_m = w_pad.reshape(Cout, C, gh, s, gw, s).transpose(0, 2, 4, 3, 5, 1)
    w_m = w_m.reshape(Cout, J).astype(compute_dtype)

    # ---- grid: batch blocks x HW blocks (both parallel) ---------------------
    nb = max(1, min(batch_block, N))
    n_pad = pl.cdiv(N, nb) * nb
    if n_pad != N:
        patches = jnp.pad(patches, ((0, n_pad - N), (0, 0), (0, 0)))
    hw_block = HW // 2 if (HW % 256 == 0) else HW   # 128-multiple or full dim
    n_hw = HW // hw_block

    kernel = functools.partial(_gfb_kernel, nb=nb)
    out = pl.pallas_call(
        kernel,
        out_shape=jax.ShapeDtypeStruct((n_pad, Cout, HW), jnp.float32),
        grid=(n_pad // nb, n_hw),
        in_specs=[pl.BlockSpec((Cout, J), lambda i, j: (0, 0)),
                  pl.BlockSpec((nb, J, hw_block), lambda i, j: (i, 0, j))],
        out_specs=pl.BlockSpec((nb, Cout, hw_block), lambda i, j: (i, 0, j)),
        compiler_params=pltpu.CompilerParams(
            dimension_semantics=("parallel", "parallel")),
    )(w_m, patches)
    # Trailing reshape (split of the contiguous last dim) is free.
    return out[:N].reshape(N, Cout, Ho, Wo)


# ----------------------------------------------------------------------------
# Reference (XLA conv) and self-test.
# ----------------------------------------------------------------------------
def _reference(x, weight, stride, pad):
    return jax.lax.conv_general_dilated(
        x.astype(jnp.float32), weight.astype(jnp.float32),
        window_strides=(stride, stride), padding=((pad, pad), (pad, pad)),
        dimension_numbers=("NCHW", "OIHW", "NCHW"),
        precision=jax.lax.Precision.HIGHEST)


if __name__ == "__main__":
    # Small shapes consistent with a stride-4 Gabor front-end:
    # 64x64 RGB input -> 16x16 output (Ho*Wo = 256 lanes, lane-dense stores).
    N, C, H, W = 2, 3, 64, 64
    K, Cout, stride = 7, 32, 4

    x = jax.random.normal(jax.random.PRNGKey(0), (N, C, H, W),
                          dtype=jnp.float32)
    w = jnp.asarray(build_gfb_weight(Cout, C, K))

    fwd = jax.jit(lambda xx, ww: gfb_forward(xx, ww, stride))
    out = jax.block_until_ready(fwd(x, w))

    p = K // 2
    Ho = (H + 2 * p - K) // stride + 1
    Wo = (W + 2 * p - K) // stride + 1
    assert out.shape == (N, Cout, Ho, Wo), out.shape

    # Strict check against a reference run on the same bf16-rounded operands
    # (remaining difference is f32 accumulation order only).
    xb = x.astype(jnp.bfloat16).astype(jnp.float32)
    wb = w.astype(jnp.bfloat16).astype(jnp.float32)
    ref_b = jax.block_until_ready(_reference(xb, wb, stride, p))
    np.testing.assert_allclose(np.asarray(out), np.asarray(ref_b),
                               rtol=1e-4, atol=1e-4)

    # Looser check against the full-f32 module semantics (difference is only
    # the bf16 operand quantization chosen for TPU bandwidth/MXU efficiency).
    ref_f = jax.block_until_ready(_reference(x, w, stride, p))
    np.testing.assert_allclose(np.asarray(out), np.asarray(ref_f),
                               rtol=2e-2, atol=2e-2)

    print("KERNEL_OK")
</pallas_src>

<mosaic_0001>
module attributes {stable_mosaic.version = 11 : i64} {
  func.func @_gfb_kernel(%arg0: i32, %arg1: i32, %arg2: memref<32x192xbf16, #tpu.memory_space<vmem>>, %arg3: memref<2x192x128xbf16, #tpu.memory_space<vmem>>, %arg4: memref<2x32x128xf32, #tpu.memory_space<vmem>>) attributes {dimension_semantics = [#tpu.dimension_semantics<parallel>, #tpu.dimension_semantics<parallel>], iteration_bounds = array<i64: 1, 2>, scalar_prefetch = 0 : i64, scratch_operands = 0 : i64, tpu.core_type = #tpu.core_type<tc>, window_params = [{pipeline_mode = #tpu.pipeline_mode<synchronous>, transform_indices = @transform_0, window_bounds = array<i64: 32, 192>}, {transform_indices = @transform_1, window_bounds = array<i64: 2, 192, 128>}, {transform_indices = @transform_2, window_bounds = array<i64: 2, 32, 128>}]} {
    %c0 = arith.constant 0 : index
    %c0_0 = arith.constant 0 : index
    %0 = vector.load %arg2[%c0, %c0_0] : memref<32x192xbf16, #tpu.memory_space<vmem>>, vector<32x192xbf16>
    %c0_1 = arith.constant 0 : index
    %c0_2 = arith.constant 0 : index
    %c0_3 = arith.constant 0 : index
    %1 = vector.load %arg3[%c0_1, %c0_2, %c0_3] : memref<2x192x128xbf16, #tpu.memory_space<vmem>>, vector<1x192x128xbf16>
    %2 = vector.shape_cast %1 : vector<1x192x128xbf16> to vector<192x128xbf16>
    %cst = arith.constant dense<0.000000e+00> : vector<32x128xf32>
    %3 = tpu.matmul %0, %2, %cst {dimension_numbers = #tpu.dot_dimension_numbers<[1], [0], [0], [1], [0, 0, 1, 1], [], []>} : vector<32x192xbf16>, vector<192x128xbf16>, vector<32x128xf32> -> vector<32x128xf32>
    %c0_4 = arith.constant 0 : index
    %c0_5 = arith.constant 0 : index
    %c0_6 = arith.constant 0 : index
    %4 = vector.load %arg4[%c0_4, %c0_5, %c0_6] : memref<2x32x128xf32, #tpu.memory_space<vmem>>, vector<1x32x128xf32>
    %5 = vector.shape_cast %4 : vector<1x32x128xf32> to vector<32x128xf32>
    %6 = vector.shape_cast %3 : vector<32x128xf32> to vector<1x32x128xf32>
    tpu.vector_store %arg4[%c0_4, %c0_5, %c0_6], %6 {strides = array<i32>} : memref<2x32x128xf32, #tpu.memory_space<vmem>>, vector<1x32x128xf32>,
    %c1 = arith.constant 1 : index
    %c0_7 = arith.constant 0 : index
    %c0_8 = arith.constant 0 : index
    %7 = vector.load %arg3[%c1, %c0_7, %c0_8] : memref<2x192x128xbf16, #tpu.memory_space<vmem>>, vector<1x192x128xbf16>
    %8 = vector.shape_cast %7 : vector<1x192x128xbf16> to vector<192x128xbf16>
    %cst_9 = arith.constant dense<0.000000e+00> : vector<32x128xf32>
    %9 = tpu.matmul %0, %8, %cst_9 {dimension_numbers = #tpu.dot_dimension_numbers<[1], [0], [0], [1], [0, 0, 1, 1], [], []>} : vector<32x192xbf16>, vector<192x128xbf16>, vector<32x128xf32> -> vector<32x128xf32>
    %c1_10 = arith.constant 1 : index
    %c0_11 = arith.constant 0 : index
    %c0_12 = arith.constant 0 : index
    %10 = vector.load %arg4[%c1_10, %c0_11, %c0_12] : memref<2x32x128xf32, #tpu.memory_space<vmem>>, vector<1x32x128xf32>
    %11 = vector.shape_cast %10 : vector<1x32x128xf32> to vector<32x128xf32>
    %12 = vector.shape_cast %9 : vector<32x128xf32> to vector<1x32x128xf32>
    tpu.vector_store %arg4[%c1_10, %c0_11, %c0_12], %12 {strides = array<i32>} : memref<2x32x128xf32, #tpu.memory_space<vmem>>, vector<1x32x128xf32>,
    return
  }
  func.func @transform_0(%arg0: i32, %arg1: i32) -> (i32, i32) {
    %c0_i32 = arith.constant 0 : i32
    %c0_i32_0 = arith.constant 0 : i32
    %c0_i32_1 = arith.constant 0 : i32
    return %c0_i32, %c0_i32_0 : i32, i32
  }
  func.func @transform_1(%arg0: i32, %arg1: i32) -> (i32, i32, i32) {
    %c0_i32 = arith.constant 0 : i32
    %c0_i32_0 = arith.constant 0 : i32
    return %arg0, %c0_i32, %arg1 : i32, i32, i32
  }
  func.func @transform_2(%arg0: i32, %arg1: i32) -> (i32, i32, i32) {
    %c0_i32 = arith.constant 0 : i32
    %c0_i32_0 = arith.constant 0 : i32
    return %arg0, %c0_i32, %arg1 : i32, i32, i32
  }
}

</mosaic_0001>

<bundles_post_ra>
// kernel: _lambda_.1
= control target key start
LH: loop header
LB: loop body
LE: loop exit
PB: predicated region body
PF: predicated region fallthrough
CT: control target
= control target key end

     0   :  { %s1059_s9 = smov 0   ;;  %s1061_s10 = smov 0   ;;  %s1319_s0 = inlined_call_operand.vmem [shape: bf16[32,192], index: 0, kind: input, shape index: {}]   ;;  %s1320_s1 = inlined_call_operand.vmem [shape: bf16[2,192,256], index: 1, kind: input, shape index: {}]   ;;  %s1321_s2 = inlined_call_operand.vmem [shape: f32[2,32,256], index: 2, kind: output, shape index: {}]  }
   0x1   :  { %s1063_s11 = smov 0   ;;  %s1065_s12 = smov 0  }
   0x2   :  { %s1067_s13 = smov 0  }
   0x3 LB: > { %s21_s14 = sadd.s32 1, %s1037_s12  ;;  %s859_s15 = sadd.s32 4294967295, %s1041_s13   ;;  %s1041_s13 = sphi %s1067_s13, %s12_s13   ;;  %s1037_s12 = sphi %s1065_s12, %s1326_s12   ;;  %s1033_s11 = sphi %s1063_s11, %s1325_s11   ;;  %s1029_s10 = sphi %s1061_s10, %s1324_s10   ;;  %s1025_s9 = sphi %s1059_s9, %s1323_s9  }
   0x4   : > { %p22_p0 = scmp.ge.s32.totalorder %s21_s14, 2  ;;  %p61_p1 = scmp.ne.s32.totalorder %s1029_s10, %s1025_s9 }
   0x5   : > { %p62_p2 = scmp.eq.s32.totalorder %s1041_s13, 0  ;;  %p93_p4 = scmp.eq.s32.totalorder %s859_s15, 1 }
   0x6   : > { %s1328_s14 = smov (%p22_p0, %s21_s14), 0  ;;  %s54_s17 = sadd.s32 1, %s1029_s10 }
   0x7   : > { %p63_p3 = por %p62_p2, %p61_p1  ;;  %s50_s16 = ssub.s32 %s1037_s12, %s1328_s14 }
   0x8   : > { %p52_p5 = scmp.eq.s32.totalorder %s50_s16, 0  ;;  %p1094_p6 = por %p93_p4, %p61_p1 }
   0x9   : > { %p862_p7 = scmp.ge.s32.totalorder %s1041_s13, 2 }
   0xa   : > { %s1099_s19 = scalar_select %p52_p5, %s1029_s10, %s54_s17  }
   0xb   : > { %118 = sbr.rel (%p862_p7) target bundleno = 54 (0x36), region = 20 }
  0x12   : > { %121 = sbr.rel (!%p63_p3) target bundleno = 54 (0x36), region = 24  ;;  %s123_s20 = sand.u32 (%p63_p3), 1, %s1029_s10  }
  0x13   : > { %s863_s21 = sshll.u32 (%p63_p3), %s1037_s12, 2  ;;  %s930_s22 = smul.u32 (%p63_p3), 192, %s123_s20 }
  0x14   : > { %s1107_s25 = scalar_lea.vmem (%p63_p3), %s1320_s1, %s863_s21 }
  0x15   : > { %v146_v0 = vld [vmem:[%s1107_s25] sm:$0xf] (%p63_p3)  ;;  %v148_v1 = vld [vmem:[%s1107_s25 + $0x8] sm:$0xf] (%p63_p3)  ;;  %v150_v2 = vld [vmem:[%s1107_s25 + $0x10] sm:$0xf] (%p63_p3) }
  0x16   : > { %v152_v3 = vld [vmem:[%s1107_s25 + $0x18] sm:$0xf] (%p63_p3)  ;;  %v154_v4 = vld [vmem:[%s1107_s25 + $0x20] sm:$0xf] (%p63_p3)  ;;  %s1114_s26 = scalar_lea.vmem (%p63_p3), [#allocation2], %s930_s22 }
  0x17   : > { %147 = vst [vmem:[%s1114_s26] sm:$0xf] (%p63_p3), %v146_v0  ;;  %149 = vst [vmem:[%s1114_s26 + $0x4] sm:$0xf] (%p63_p3), %v148_v1  ;;  %v156_v5 = vld [vmem:[%s1107_s25 + $0x28] sm:$0xf] (%p63_p3) }
  0x18   : > { %151 = vst [vmem:[%s1114_s26 + $0x8] sm:$0xf] (%p63_p3), %v150_v2  ;;  %153 = vst [vmem:[%s1114_s26 + $0xc] sm:$0xf] (%p63_p3), %v152_v3  ;;  %v158_v6 = vld [vmem:[%s1107_s25 + $0x30] sm:$0xf] (%p63_p3) }
  0x19   : > { %155 = vst [vmem:[%s1114_s26 + $0x10] sm:$0xf] %v154_v4  ;;  %v160_v7 = vld [vmem:[%s1107_s25 + $0x38] sm:$0xf]  ;;  %157 = vst [vmem:[%s1114_s26 + $0x14] sm:$0xf] %v156_v5 }
  0x1a   : > { %159 = vst [vmem:[%s1114_s26 + $0x18] sm:$0xf] %v158_v6  ;;  %161 = vst [vmem:[%s1114_s26 + $0x1c] sm:$0xf] %v160_v7  ;;  %v162_v8 = vld [vmem:[%s1107_s25 + $0x40] sm:$0xf] }
  0x1b   : > { %v164_v9 = vld [vmem:[%s1107_s25 + $0x48] sm:$0xf]  ;;  %v166_v10 = vld [vmem:[%s1107_s25 + $0x50] sm:$0xf]  ;;  %163 = vst [vmem:[%s1114_s26 + $0x20] sm:$0xf] %v162_v8 }
  0x1c   : > { %165 = vst [vmem:[%s1114_s26 + $0x24] sm:$0xf] %v164_v9  ;;  %167 = vst [vmem:[%s1114_s26 + $0x28] sm:$0xf] %v166_v10  ;;  %v168_v11 = vld [vmem:[%s1107_s25 + $0x58] sm:$0xf] }
  0x1d   : > { %v170_v12 = vld [vmem:[%s1107_s25 + $0x60] sm:$0xf]  ;;  %v172_v13 = vld [vmem:[%s1107_s25 + $0x68] sm:$0xf]  ;;  %169 = vst [vmem:[%s1114_s26 + $0x2c] sm:$0xf] %v168_v11 }
  0x1e   : > { %171 = vst [vmem:[%s1114_s26 + $0x30] sm:$0xf] %v170_v12  ;;  %173 = vst [vmem:[%s1114_s26 + $0x34] sm:$0xf] %v172_v13  ;;  %v174_v14 = vld [vmem:[%s1107_s25 + $0x70] sm:$0xf] }
  0x1f   : > { %v176_v15 = vld [vmem:[%s1107_s25 + $0x78] sm:$0xf]  ;;  %v178_v16 = vld [vmem:[%s1107_s25 + $0x80] sm:$0xf]  ;;  %175 = vst [vmem:[%s1114_s26 + $0x38] sm:$0xf] %v174_v14 }
  0x20   : > { %177 = vst [vmem:[%s1114_s26 + $0x3c] sm:$0xf] %v176_v15  ;;  %179 = vst [vmem:[%s1114_s26 + $0x40] sm:$0xf] %v178_v16  ;;  %v180_v17 = vld [vmem:[%s1107_s25 + $0x88] sm:$0xf] }
  0x21   : > { %v182_v18 = vld [vmem:[%s1107_s25 + $0x90] sm:$0xf]  ;;  %v184_v19 = vld [vmem:[%s1107_s25 + $0x98] sm:$0xf]  ;;  %181 = vst [vmem:[%s1114_s26 + $0x44] sm:$0xf] %v180_v17 }
  0x22   : > { %183 = vst [vmem:[%s1114_s26 + $0x48] sm:$0xf] %v182_v18  ;;  %185 = vst [vmem:[%s1114_s26 + $0x4c] sm:$0xf] %v184_v19  ;;  %v186_v20 = vld [vmem:[%s1107_s25 + $0xa0] sm:$0xf] }
  0x23   : > { %v188_v21 = vld [vmem:[%s1107_s25 + $0xa8] sm:$0xf]  ;;  %v190_v22 = vld [vmem:[%s1107_s25 + $0xb0] sm:$0xf]  ;;  %187 = vst [vmem:[%s1114_s26 + $0x50] sm:$0xf] %v186_v20 }
  0x24   : > { %189 = vst [vmem:[%s1114_s26 + $0x54] sm:$0xf] %v188_v21  ;;  %191 = vst [vmem:[%s1114_s26 + $0x58] sm:$0xf] %v190_v22  ;;  %v192_v23 = vld [vmem:[%s1107_s25 + $0xb8] sm:$0xf] }
  0x25   : > { %v194_v24 = vld [vmem:[%s1107_s25 + $0xc0] sm:$0xf]  ;;  %v196_v25 = vld [vmem:[%s1107_s25 + $0xc8] sm:$0xf]  ;;  %193 = vst [vmem:[%s1114_s26 + $0x5c] sm:$0xf] %v192_v23 }
  0x26   : > { %195 = vst [vmem:[%s1114_s26 + $0x60] sm:$0xf] %v194_v24  ;;  %197 = vst [vmem:[%s1114_s26 + $0x64] sm:$0xf] %v196_v25  ;;  %v198_v26 = vld [vmem:[%s1107_s25 + $0xd0] sm:$0xf] }
  0x27   : > { %v200_v27 = vld [vmem:[%s1107_s25 + $0xd8] sm:$0xf]  ;;  %v202_v28 = vld [vmem:[%s1107_s25 + $0xe0] sm:$0xf]  ;;  %199 = vst [vmem:[%s1114_s26 + $0x68] sm:$0xf] %v198_v26 }
  0x28   : > { %201 = vst [vmem:[%s1114_s26 + $0x6c] sm:$0xf] %v200_v27  ;;  %203 = vst [vmem:[%s1114_s26 + $0x70] sm:$0xf] %v202_v28  ;;  %v204_v29 = vld [vmem:[%s1107_s25 + $0xe8] sm:$0xf] }
  0x29   : > { %v206_v30 = vld [vmem:[%s1107_s25 + $0xf0] sm:$0xf]  ;;  %v208_v31 = vld [vmem:[%s1107_s25 + $0xf8] sm:$0xf]  ;;  %205 = vst [vmem:[%s1114_s26 + $0x74] sm:$0xf] %v204_v29 }
  0x2a   : > { %207 = vst [vmem:[%s1114_s26 + $0x78] sm:$0xf] %v206_v30  ;;  %209 = vst [vmem:[%s1114_s26 + $0x7c] sm:$0xf] %v208_v31  ;;  %v210_v32 = vld [vmem:[%s1107_s25 + $0x100] sm:$0xf] }
  0x2b   : > { %v212_v33 = vld [vmem:[%s1107_s25 + $0x108] sm:$0xf]  ;;  %v214_v34 = vld [vmem:[%s1107_s25 + $0x110] sm:$0xf]  ;;  %211 = vst [vmem:[%s1114_s26 + $0x80] sm:$0xf] %v210_v32 }
  0x2c   : > { %213 = vst [vmem:[%s1114_s26 + $0x84] sm:$0xf] %v212_v33  ;;  %215 = vst [vmem:[%s1114_s26 + $0x88] sm:$0xf] %v214_v34  ;;  %v216_v35 = vld [vmem:[%s1107_s25 + $0x118] sm:$0xf] }
  0x2d   : > { %v218_v36 = vld [vmem:[%s1107_s25 + $0x120] sm:$0xf]  ;;  %v220_v37 = vld [vmem:[%s1107_s25 + $0x128] sm:$0xf]  ;;  %217 = vst [vmem:[%s1114_s26 + $0x8c] sm:$0xf] %v216_v35 }
  0x2e   : > { %219 = vst [vmem:[%s1114_s26 + $0x90] sm:$0xf] %v218_v36  ;;  %221 = vst [vmem:[%s1114_s26 + $0x94] sm:$0xf] %v220_v37  ;;  %v222_v38 = vld [vmem:[%s1107_s25 + $0x130] sm:$0xf] }
  0x2f   : > { %v224_v39 = vld [vmem:[%s1107_s25 + $0x138] sm:$0xf]  ;;  %v226_v40 = vld [vmem:[%s1107_s25 + $0x140] sm:$0xf]  ;;  %223 = vst [vmem:[%s1114_s26 + $0x98] sm:$0xf] %v222_v38 }
  0x30   : > { %225 = vst [vmem:[%s1114_s26 + $0x9c] sm:$0xf] %v224_v39  ;;  %227 = vst [vmem:[%s1114_s26 + $0xa0] sm:$0xf] %v226_v40  ;;  %v228_v41 = vld [vmem:[%s1107_s25 + $0x148] sm:$0xf] }
  0x31   : > { %v230_v42 = vld [vmem:[%s1107_s25 + $0x150] sm:$0xf]  ;;  %v232_v43 = vld [vmem:[%s1107_s25 + $0x158] sm:$0xf]  ;;  %229 = vst [vmem:[%s1114_s26 + $0xa4] sm:$0xf] %v228_v41 }
  0x32   : > { %231 = vst [vmem:[%s1114_s26 + $0xa8] sm:$0xf] %v230_v42  ;;  %233 = vst [vmem:[%s1114_s26 + $0xac] sm:$0xf] %v232_v43  ;;  %v234_v44 = vld [vmem:[%s1107_s25 + $0x160] sm:$0xf] }
  0x33   : > { %v236_v45 = vld [vmem:[%s1107_s25 + $0x168] sm:$0xf]  ;;  %v238_v46 = vld [vmem:[%s1107_s25 + $0x170] sm:$0xf]  ;;  %235 = vst [vmem:[%s1114_s26 + $0xb0] sm:$0xf] %v234_v44 }
  0x34   : > { %237 = vst [vmem:[%s1114_s26 + $0xb4] sm:$0xf] %v236_v45  ;;  %239 = vst [vmem:[%s1114_s26 + $0xb8] sm:$0xf] %v238_v46  ;;  %v240_v47 = vld [vmem:[%s1107_s25 + $0x178] sm:$0xf] }
  0x35   : > { %241 = vst [vmem:[%s1114_s26 + $0xbc] sm:$0xf] %v240_v47 }
  0x36 PF: > { %p864_p8 = scmp.ge.s32.totalorder %s1041_s13, 1  ;;  %p359_p9 = scmp.lt.s32.totalorder %s1041_s13, 3 }
  0x38   : > { %p360_p10 = pnand %p864_p8, %p359_p9 }
  0x39   : > { %s366_s27 = sand.u32 (!%p360_p10), 1, %s1025_s9   ;;  %v1043_v48 = vmov (!%p360_p10), 0   ;;  %v999_v49 = vld [vmem:[%s1319_s0 + $0x4] ss:$8 sps:$4 sm:$0xff] (!%p360_p10)   ;;  %vm507_vm0 = vcmask (!%p360_p10), 523264  }
  0x3a   : > { %363 = sbr.rel (%p360_p10) target bundleno = 342 (0x156), region = 65  ;;  %514 = vmatprep.subr.bf16.mxu0 (!%p360_p10), %v1043_v48  ;;  %664 = vmatprep.subr.bf16.mxu1 (!%p360_p10), %v1043_v48  ;;  %v997_v10 = vld [vmem:[%s1319_s0] ss:$8 sps:$4 sm:$0xff] (!%p360_p10)   ;;  %v1000_v11 = vld [vmem:[%s1319_s0 + $0x14] ss:$8 sps:$4 sm:$0xff] (!%p360_p10)   ;;  %s865_s16 = sshll.u32 (!%p360_p10), %s366_s27, 6 }
  0x3b   : > { %s931_s28 = smul.u32 (!%p360_p10), 192, %s366_s27  ;;  %882 = vmatprep.mubr.msk.bf16.mxu0 (!%p360_p10), %vm507_vm0, %v999_v49  ;;  %920 = vmatprep.mubr.msk.bf16.mxu1 (!%p360_p10), %vm507_vm0, %v999_v49  ;;  %v1002_v12 = vld [vmem:[%s1319_s0 + $0x10] ss:$8 sps:$4 sm:$0xff] (!%p360_p10)   ;;  %s1280_s17 = scalar_lea.vmem (!%p360_p10), [#allocation3], %s865_s16 }
  0x3d   : > { %s1219_s3 = scalar_lea.vmem (!%p360_p10), [#allocation2], %s931_s28 }
  0x3e   : > { %v973_v50 = vld [vmem:[%s1219_s3] sm:$0xff] (!%p360_p10)   ;;  %v975_v52 = vld [vmem:[%s1219_s3 + $0x8] sm:$0xff] (!%p360_p10)   ;;  %v977_v54 = vld [vmem:[%s1219_s3 + $0x10] sm:$0xff] (!%p360_p10)  }
  0x3f   : > { %v974_v51 = vld [vmem:[%s1219_s3 + $0x60] sm:$0xff] (!%p360_p10)   ;;  %515 = vmatpush1.bf16.msra.mxu0 (!%p360_p10), %v973_v50  ;;  %v976_v53 = vld [vmem:[%s1219_s3 + $0x68] sm:$0xff] (!%p360_p10)   ;;  %v978_v55 = vld [vmem:[%s1219_s3 + $0x70] sm:$0xff] (!%p360_p10)  }
  0x40   : > { %665 = vmatpush1.bf16.msra.mxu1 (!%p360_p10), %v974_v51  ;;  %516 = vmatprep.subr.bf16.mxu0 (!%p360_p10), %v1043_v48  ;;  %v979_v56 = vld [vmem:[%s1219_s3 + $0x18] sm:$0xff] (!%p360_p10)   ;;  %v981_v58 = vld [vmem:[%s1219_s3 + $0x20] sm:$0xff] (!%p360_p10)   ;;  %v983_v60 = vld [vmem:[%s1219_s3 + $0x28] sm:$0xff] (!%p360_p10)  }
  0x41   : > { %666 = vmatprep.subr.bf16.mxu1 %v1043_v48  ;;  %v980_v57 = vld [vmem:[%s1219_s3 + $0x78] sm:$0xff]   ;;  %v982_v59 = vld [vmem:[%s1219_s3 + $0x80] sm:$0xff]   ;;  %v984_v61 = vld [vmem:[%s1219_s3 + $0x88] sm:$0xff]   ;;  %s927_s9 = sshll.u32 (%p1094_p6), %s1033_s11, 3 }
  0x42   : > { %v985_v62 = vld [vmem:[%s1219_s3 + $0x30] sm:$0xff]   ;;  %v987_v0 = vld [vmem:[%s1219_s3 + $0x38] sm:$0xff]   ;;  %v989_v2 = vld [vmem:[%s1219_s3 + $0x40] sm:$0xff]   ;;  %s729_s22 = scalar_lea.vmem (%p1094_p6), %s1321_s2, %s927_s9 }
  0x43   : > { %517 = vmatpush1.bf16.msra.mxu0 %v975_v52  ;;  %v986_v63 = vld [vmem:[%s1219_s3 + $0x90] sm:$0xff]   ;;  %v988_v1 = vld [vmem:[%s1219_s3 + $0x98] sm:$0xff]   ;;  %v990_v3 = vld [vmem:[%s1219_s3 + $0xa0] sm:$0xff]  }
  0x44   : > { %667 = vmatpush1.bf16.msra.mxu1 %v976_v53  ;;  %518 = vmatprep.subr.bf16.mxu0 %v1043_v48  ;;  %v991_v4 = vld [vmem:[%s1219_s3 + $0x48] sm:$0xff]   ;;  %v993_v6 = vld [vmem:[%s1219_s3 + $0x50] sm:$0xff]   ;;  %v995_v8 = vld [vmem:[%s1219_s3 + $0x58] sm:$0xff]  }
  0x45   : > { %668 = vmatprep.subr.bf16.mxu1 %v1043_v48  ;;  %v992_v5 = vld [vmem:[%s1219_s3 + $0xa8] sm:$0xff]   ;;  %v994_v7 = vld [vmem:[%s1219_s3 + $0xb0] sm:$0xff]   ;;  %v996_v9 = vld [vmem:[%s1219_s3 + $0xb8] sm:$0xff]  }
  0x47   : > { %519 = vmatpush1.bf16.msra.mxu0 %v977_v54 }
  0x48   : > { %669 = vmatpush1.bf16.msra.mxu1 %v978_v55  ;;  %520 = vmatprep.subr.bf16.mxu0 %v1043_v48 }
  0x49   : > { %670 = vmatprep.subr.bf16.mxu1 %v1043_v48 }
  0x4b   : > { %521 = vmatpush1.bf16.msra.mxu0 %v979_v56 }
  0x4c   : > { %671 = vmatpush1.bf16.msra.mxu1 %v980_v57  ;;  %522 = vmatprep.subr.bf16.mxu0 %v1043_v48 }
  0x4d   : > { %672 = vmatprep.subr.bf16.mxu1 %v1043_v48 }
  0x4f   : > { %523 = vmatpush1.bf16.msra.mxu0 %v981_v58 }
  0x50   : > { %673 = vmatpush1.bf16.msra.mxu1 %v982_v59  ;;  %524 = vmatprep.subr.bf16.mxu0 %v1043_v48 }
  0x51   : > { %674 = vmatprep.subr.bf16.mxu1 %v1043_v48 }
  0x53   : > { %525 = vmatpush1.bf16.msra.mxu0 %v983_v60 }
  0x54   : > { %675 = vmatpush1.bf16.msra.mxu1 %v984_v61  ;;  %526 = vmatprep.subr.bf16.mxu0 %v1043_v48 }
  0x55   : > { %676 = vmatprep.subr.bf16.mxu1 %v1043_v48 }
  0x57   : > { %527 = vmatpush1.bf16.msra.mxu0 %v985_v62 }
  0x58   : > { %677 = vmatpush1.bf16.msra.mxu1 %v986_v63  ;;  %528 = vmatprep.subr.bf16.mxu0 %v1043_v48 }
  0x59   : > { %678 = vmatprep.subr.bf16.mxu1 %v1043_v48 }
  0x5b   : > { %529 = vmatpush1.bf16.msra.mxu0 %v987_v0 }
  0x5c   : > { %679 = vmatpush1.bf16.msra.mxu1 %v988_v1  ;;  %530 = vmatprep.subr.bf16.mxu0 %v1043_v48 }
  0x5d   : > { %680 = vmatprep.subr.bf16.mxu1 %v1043_v48 }
  0x5f   : > { %531 = vmatpush1.bf16.msra.mxu0 %v989_v2 }
  0x60   : > { %681 = vmatpush1.bf16.msra.mxu1 %v990_v3  ;;  %532 = vmatprep.subr.bf16.mxu0 %v1043_v48 }
  0x61   : > { %682 = vmatprep.subr.bf16.mxu1 %v1043_v48 }
  0x63   : > { %533 = vmatpush1.bf16.msra.mxu0 %v991_v4 }
  0x64   : > { %683 = vmatpush1.bf16.msra.mxu1 %v992_v5  ;;  %534 = vmatprep.subr.bf16.mxu0 %v1043_v48 }
  0x65   : > { %684 = vmatprep.subr.bf16.mxu1 %v1043_v48 }
  0x67   : > { %535 = vmatpush1.bf16.msra.mxu0 %v993_v6 }
  0x68   : > { %685 = vmatpush1.bf16.msra.mxu1 %v994_v7  ;;  %536 = vmatprep.subr.bf16.mxu0 %v1043_v48 }
  0x69   : > { %686 = vmatprep.subr.bf16.mxu1 %v1043_v48 }
  0x6b   : > { %537 = vmatpush1.bf16.msra.mxu0 %v995_v8 }
  0x6c   : > { %687 = vmatpush1.bf16.msra.mxu1 %v996_v9 }
  0x6e   : > { %547 = vmatmul.mubr.bf16.vlgmr.msra.gmra.mrb[0].mxu0 %v997_v10 }
  0x6f   : > { %697 = vmatmul.mubr.bf16.vlgmr.msra.gmra.mrb[0].mxu1 %v997_v10  ;;  %883 = vmatprep.mubr.msk.bf16.mxu0 %vm507_vm0, %v1000_v11 }
  0x70   : > { %921 = vmatprep.mubr.msk.bf16.mxu1 %vm507_vm0, %v1000_v11 }
  0x76   : > { %555 = vmatmul.mubr.bf16.gmra.mrb[4].mxu0 %v1002_v12 }
  0x77   : > { %705 = vmatmul.mubr.bf16.gmra.mrb[4].mxu1 %v1002_v12 }
 0x141   : > { %v548_v13 = vpop.f32.mrb[0].mxu0 }
 0x142   : > { %563 = vst [vmem:[%s1280_s17] sm:$0xff] %v548_v13  ;;  %v698_v14 = vpop.f32.mrb[0].mxu1  ;;  %v550_v15 = vpop.f32.mrb[1].mxu0 }
 0x143   : > { %922 = vst [vmem:[%s1280_s17 + $0x20] sm:$0xff] %v698_v14  ;;  %v700_v16 = vpop.f32.mrb[1].mxu1  ;;  %v551_v17 = vpop.f32.mrb[2].mxu0 }
 0x144   : > { %564 = vst [vmem:[%s1280_s17 + $0x8] sm:$0xff] %v551_v17  ;;  %v701_v18 = vpop.f32.mrb[2].mxu1  ;;  %v553_v19 = vpop.f32.mrb[3].mxu0 }
 0x145   : > { %923 = vst [vmem:[%s1280_s17 + $0x28] sm:$0xff] %v701_v18  ;;  %v703_v20 = vpop.f32.mrb[3].mxu1 }
 0x147   : > { %724 = sbr.rel (!%p1094_p6) target bundleno = 342 (0x156), region = 73 }
 0x149   : > { %v556_v21 = vpop.f32.mrb[4].mxu0  ;;  %v771_v29 = vld [vmem:[%s1280_s17] sm:$0xff] (%p1094_p6) }
 0x14a   : > { %565 = vst [vmem:[%s1280_s17 + $0x10] sm:$0xff] %v556_v21  ;;  %v706_v22 = vpop.f32.mrb[4].mxu1  ;;  %v558_v23 = vpop.f32.mrb[5].mxu0  ;;  %v779_v33 = vld [vmem:[%s1280_s17 + $0x20] sm:$0xff] (%p1094_p6)  ;;  %772 = vst [vmem:[%s729_s22] sm:$0xff] (%p1094_p6), %v771_v29 }
 0x14b   : > { %924 = vst [vmem:[%s1280_s17 + $0x30] sm:$0xff] %v706_v22  ;;  %v708_v24 = vpop.f32.mrb[5].mxu1  ;;  %v559_v25 = vpop.f32.mrb[6].mxu0  ;;  %v773_v30 = vld [vmem:[%s1280_s17 + $0x8] sm:$0xff] (%p1094_p6)  ;;  %780 = vst [vmem:[%s729_s22 + $0x40] sm:$0xff] (%p1094_p6), %v779_v33 }
 0x14c   : > { %566 = vst [vmem:[%s1280_s17 + $0x18] sm:$0xff] %v559_v25  ;;  %v709_v26 = vpop.f32.mrb[6].mxu1  ;;  %v561_v27 = vpop.f32.mrb[7].mxu0  ;;  %v781_v34 = vld [vmem:[%s1280_s17 + $0x28] sm:$0xff] (%p1094_p6)  ;;  %774 = vst [vmem:[%s729_s22 + $0x10] sm:$0xff] (%p1094_p6), %v773_v30 }
 0x14d   : > { %925 = vst [vmem:[%s1280_s17 + $0x38] sm:$0xff] %v709_v26  ;;  %v711_v28 = vpop.f32.mrb[7].mxu1  ;;  %782 = vst [vmem:[%s729_s22 + $0x50] sm:$0xff] (%p1094_p6), %v781_v34 }
 0x151   : > { %v775_v31 = vld [vmem:[%s1280_s17 + $0x10] sm:$0xff] }
 0x152   : > { %776 = vst [vmem:[%s729_s22 + $0x20] sm:$0xff] %v775_v31  ;;  %v783_v35 = vld [vmem:[%s1280_s17 + $0x30] sm:$0xff] }
 0x153   : > { %v777_v32 = vld [vmem:[%s1280_s17 + $0x18] sm:$0xff]  ;;  %784 = vst [vmem:[%s729_s22 + $0x60] sm:$0xff] %v783_v35 }
 0x154   : > { %778 = vst [vmem:[%s729_s22 + $0x30] sm:$0xff] %v777_v32  ;;  %v785_v36 = vld [vmem:[%s1280_s17 + $0x38] sm:$0xff] }
 0x155   : > { %786 = vst [vmem:[%s729_s22 + $0x70] sm:$0xff] %v785_v36 }
 0x156 PF: > { %s12_s13 = sadd.s32 1, %s1041_s13   ;;  %s1323_s9 = smov %s1029_s10 }
 0x157   : > { %p9_p11 = scmp.ge.s32.totalorder %s12_s13, 4   ;;  %s1324_s10 = smov %s1099_s19 }
 0x158   : > { %s1325_s11 = smov %s1037_s12  ;;  %s1326_s12 = smov %s1328_s14 }
 0x159   :  { %11 = sbr.rel (!%p9_p11) target bundleno = 3 (0x3), region = 144 }

</bundles_post_ra>
